<compile_context>
chip_gen: v6e
topology: v6e:2x2x1
jax: 0.10.0
libtpu: 0.0.40
codegen_flags: <defaults>
</compile_context>

<pallas_src>
import jax
import jax.numpy as jnp
from jax.experimental import pallas as pl
from jax.experimental.pallas import tpu as pltpu


def actor_kernel(x_ref, w_ref, b_ref, out_ref):
    """Fused Actor heads.

    x_ref   : [B, 400] f32 (VMEM)
    w_ref   : [2, 400] f32 (VMEM)  row 0 = fc_mu.weight, row 1 = fc_sigma.weight
    b_ref   : [2]      f32 (SMEM)  [b_mu, b_sigma]
    out_ref : [B, 2]   f32 (VMEM)  col 0 = mu, col 1 = sigma
    """
    x = x_ref[...]                                   # [B, 400]
    w = w_ref[...]                                   # [2, 400] lane-dense

    # Head 0: mu = x . w_mu + b_mu   (VPU multiply + lane reduce, no MXU)
    mu = jnp.sum(x * w[0:1, :], axis=-1, keepdims=True) + b_ref[0]   # [B, 1]

    # Head 1: z = x . w_sigma + b_sigma ; sigma = softplus(z) + 1e-5
    z = jnp.sum(x * w[1:2, :], axis=-1, keepdims=True) + b_ref[1]    # [B, 1]
    sigma = jnp.maximum(z, 0.0) + jnp.log1p(jnp.exp(-jnp.abs(z))) + 1e-5

    # Single merged store ([B, 2]) -> one output writeback DMA.
    out_ref[...] = jnp.concatenate([mu, sigma], axis=-1)


def actor_forward(x, w_mu, b_mu, w_sigma, b_sigma):
    """x: [B, 400]. Weights in torch layout: w_*: [1, 400], b_*: [1].

    Returns (mu, sigma), each [B, 1] float32, matching Actor.forward.
    """
    B, D = x.shape
    # Fuse the two heads outside the kernel: lane-dense [2, D] weight + [2] bias.
    w = jnp.concatenate([w_mu, w_sigma], axis=0).astype(jnp.float32)              # [2, D]
    b = jnp.concatenate([b_mu.reshape(-1), b_sigma.reshape(-1)]).astype(jnp.float32)  # [2]

    out = pl.pallas_call(
        actor_kernel,
        out_shape=jax.ShapeDtypeStruct((B, 2), jnp.float32),
        grid=(),
        in_specs=[
            pl.BlockSpec((B, D), lambda: (0, 0)),          # x       (VMEM)
            pl.BlockSpec((2, D), lambda: (0, 0)),          # weights (VMEM, lane-dense)
            pl.BlockSpec(memory_space=pltpu.SMEM),         # biases  (SMEM scalars)
        ],
        out_specs=pl.BlockSpec((B, 2), lambda: (0, 0)),    # merged [B, 2] output
    )(x, w, b)

    return out[:, 0:1], out[:, 1:2]


def init_params(key, in_features=400, out_features=1):
    # xavier_normal_ for weights: std = sqrt(2 / (fan_in + fan_out))
    # nn.Linear default bias init: U(-1/sqrt(fan_in), 1/sqrt(fan_in))
    # Torch layout: weight [out_features, in_features], bias [out_features].
    k_wmu, k_bmu, k_wsig, k_bsig = jax.random.split(key, 4)
    std = (2.0 / (in_features + out_features)) ** 0.5
    bound = 1.0 / (in_features ** 0.5)
    w_mu = std * jax.random.normal(k_wmu, (out_features, in_features), jnp.float32)
    w_sigma = std * jax.random.normal(k_wsig, (out_features, in_features), jnp.float32)
    b_mu = jax.random.uniform(k_bmu, (out_features,), jnp.float32, -bound, bound)
    b_sigma = jax.random.uniform(k_bsig, (out_features,), jnp.float32, -bound, bound)
    return w_mu, b_mu, w_sigma, b_sigma


if __name__ == "__main__":
    key = jax.random.PRNGKey(0)
    k_x, k_p = jax.random.split(key)

    B, D = 8, 400
    x = jax.random.normal(k_x, (B, D), jnp.float32)
    w_mu, b_mu, w_sigma, b_sigma = init_params(k_p, D, 1)

    mu, sigma = actor_forward(x, w_mu, b_mu, w_sigma, b_sigma)
    jax.block_until_ready((mu, sigma))

    # Reference check in plain JAX (torch semantics: y = x @ W.T + b).
    mu_ref = x @ w_mu.T + b_mu
    z_ref = x @ w_sigma.T + b_sigma
    sigma_ref = jnp.logaddexp(z_ref, 0.0) + 1e-5

    assert mu.shape == (B, 1) and sigma.shape == (B, 1)
    assert jnp.allclose(mu, mu_ref, atol=1e-5), "mu mismatch"
    assert jnp.allclose(sigma, sigma_ref, atol=1e-5), "sigma mismatch"

    print("KERNEL_OK")
</pallas_src>

<mosaic_0001>
module attributes {stable_mosaic.version = 11 : i64} {
  func.func @actor_kernel(%arg0: memref<8x400xf32, #tpu.memory_space<vmem>>, %arg1: memref<2x400xf32, #tpu.memory_space<vmem>>, %arg2: memref<2xf32, #tpu.memory_space<smem>>, %arg3: memref<8x2xf32, #tpu.memory_space<vmem>>) attributes {dimension_semantics = [], scalar_prefetch = 0 : i64, scratch_operands = 0 : i64, tpu.core_type = #tpu.core_type<tc>} {
    %c0 = arith.constant 0 : index
    %c0_0 = arith.constant 0 : index
    %0 = vector.load %arg0[%c0, %c0_0] : memref<8x400xf32, #tpu.memory_space<vmem>>, vector<8x400xf32>
    %c0_1 = arith.constant 0 : index
    %c0_2 = arith.constant 0 : index
    %1 = vector.load %arg1[%c0_1, %c0_2] : memref<2x400xf32, #tpu.memory_space<vmem>>, vector<2x400xf32>
    %2 = vector.extract_strided_slice %1 {offsets = [0, 0], sizes = [1, 400], strides = [1, 1]} : vector<2x400xf32> to vector<1x400xf32>
    %3 = vector.broadcast %2 : vector<1x400xf32> to vector<8x400xf32>
    %4 = arith.mulf %0, %3 : vector<8x400xf32>
    %cst = arith.constant dense<0.000000e+00> : vector<8xf32>
    %5 = vector.multi_reduction <add>, %4, %cst [1] : vector<8x400xf32> to vector<8xf32>
    %6 = vector.shape_cast %5 : vector<8xf32> to vector<8x1xf32>
    %c0_3 = arith.constant 0 : index
    %7 = memref.load %arg2[%c0_3] : memref<2xf32, #tpu.memory_space<smem>>
    %8 = vector.broadcast %7 : f32 to vector<8x1xf32>
    %9 = arith.addf %6, %8 : vector<8x1xf32>
    %10 = vector.extract_strided_slice %1 {offsets = [1, 0], sizes = [1, 400], strides = [1, 1]} : vector<2x400xf32> to vector<1x400xf32>
    %11 = vector.broadcast %10 : vector<1x400xf32> to vector<8x400xf32>
    %12 = arith.mulf %0, %11 : vector<8x400xf32>
    %cst_4 = arith.constant dense<0.000000e+00> : vector<8xf32>
    %13 = vector.multi_reduction <add>, %12, %cst_4 [1] : vector<8x400xf32> to vector<8xf32>
    %14 = vector.shape_cast %13 : vector<8xf32> to vector<8x1xf32>
    %c1 = arith.constant 1 : index
    %15 = memref.load %arg2[%c1] : memref<2xf32, #tpu.memory_space<smem>>
    %16 = vector.broadcast %15 : f32 to vector<8x1xf32>
    %17 = arith.addf %14, %16 : vector<8x1xf32>
    %cst_5 = arith.constant 0.000000e+00 : f32
    %18 = vector.broadcast %cst_5 : f32 to vector<8x1xf32>
    %19 = arith.maximumf %17, %18 : vector<8x1xf32>
    %20 = math.absf %17 : vector<8x1xf32>
    %cst_6 = arith.constant 0.000000e+00 : f32
    %21 = vector.broadcast %cst_6 : f32 to vector<8x1xf32>
    %22 = arith.subf %21, %20 : vector<8x1xf32>
    %23 = math.exp %22 : vector<8x1xf32>
    %24 = math.log1p %23 : vector<8x1xf32>
    %25 = arith.addf %19, %24 : vector<8x1xf32>
    %cst_7 = arith.constant 9.99999974E-6 : f32
    %26 = vector.broadcast %cst_7 : f32 to vector<8x1xf32>
    %27 = arith.addf %25, %26 : vector<8x1xf32>
    %28 = tpu.concatenate %9, %27 in 1 : vector<8x1xf32>, vector<8x1xf32> -> vector<8x2xf32>
    %c0_8 = arith.constant 0 : index
    %c0_9 = arith.constant 0 : index
    %29 = vector.load %arg3[%c0_8, %c0_9] : memref<8x2xf32, #tpu.memory_space<vmem>>, vector<8x2xf32>
    tpu.vector_store %arg3[%c0_8, %c0_9], %28 {strides = array<i32>} : memref<8x2xf32, #tpu.memory_space<vmem>>, vector<8x2xf32>,
    return
  }
}

</mosaic_0001>

<bundles_post_ra>
// kernel: tpu_custom_call.1
= control target key start
LH: loop header
LB: loop body
LE: loop exit
PB: predicated region body
PF: predicated region fallthrough
CT: control target
= control target key end

     0   :  { %8 = vsyncpa [#allocation3], 0  ;;  %s286_s0 = inlined_call_operand.hbm [shape: f32[8,400], index: 0, kind: input, shape index: {}]   ;;  %s287_s1 = inlined_call_operand.hbm [shape: f32[2,400], index: 1, kind: input, shape index: {}]   ;;  %s288_s2 = inlined_call_operand.vmem [shape: f32[2], index: 2, kind: input, shape index: {}]   ;;  %s289_s3 = inlined_call_operand.vmem [shape: f32[8,2], index: 3, kind: output, shape index: {}]  }
   0x1   :  { %9 = vsyncpa [#allocation6], 0 }
   0x2   :  { %10 = vsyncpa [#allocation4], 0  ;;  %s249_s12 = smov [#allocation2]   ;;  %s250_s14 = smov [#allocation5]  }
   0x3   :  { %s17_s13 = sshll.u32 %s249_s12, 4  ;;  %s27_s15 = sshll.u32 %s250_s14, 4  ;;  %s18_s13 = int_to_ptr.vmem [resolvable:$true] %s17_s13  ;;  %s28_s15 = int_to_ptr.vmem [resolvable:$true] %s27_s15 }
   0x4   :  { %s199_s16 = scalar_lea.vmem %s18_s13, 512  ;;  %p204_p1 = scmp.lt.s32.totalorder %s18_s13, %s18_s13 }
   0x5   :  { %p200_p0 = scmp.ne.s32.totalorder %s18_s13, %s199_s16  ;;  %p205_p2 = scmp.lt.s32.totalorder %s199_s16, %s199_s16 }
   0x7   :  { %p206_p3 = por %p205_p2, %p204_p1 }
   0x9   :  { %p207_p4 = pnand %p206_p3, %p200_p0 }
   0xb   :  { %210 = shalt.err (!%p207_p4)
}
   0xc   :  { %20 = dma.hbm_to_vmem [thread:$0]  %s286_s0, 512, %s18_s13, [#allocation3]  }
   0xd   :  { %s219_s19 = scalar_lea.vmem %s28_s15, 128  ;;  %p224_p6 = scmp.lt.s32.totalorder %s28_s15, %s28_s15 }
   0xe   :  { %p220_p5 = scmp.ne.s32.totalorder %s28_s15, %s219_s19  ;;  %p225_p7 = scmp.lt.s32.totalorder %s219_s19, %s219_s19 }
  0x10   :  { %p226_p8 = por %p225_p7, %p224_p6 }
  0x12   :  { %p227_p9 = pnand %p226_p8, %p220_p5 }
  0x14   :  { %230 = shalt.err (!%p227_p9)
}
  0x15   :  { %30 = dma.hbm_to_vmem [thread:$0]  %s287_s1, 128, %s28_s15, [#allocation6]  }
  0x16   :  { %s37_s24 = sshll.u32 %s288_s2, 4  ;;  %s38_s24 = int_to_ptr.vmem [resolvable:$true] %s37_s24 }
  0x17   :  { %s231_s25 = scalar_lea.vmem %s38_s24, 16  ;;  %p236_p11 = scmp.lt.s32.totalorder %s38_s24, %s38_s24 }
  0x18   :  { %p232_p10 = scmp.ne.s32.totalorder %s38_s24, %s231_s25  ;;  %p237_p12 = scmp.lt.s32.totalorder %s231_s25, %s231_s25 }
  0x1a   :  { %p238_p13 = por %p237_p12, %p236_p11 }
  0x1c   :  { %p239_p0 = pnand %p238_p13, %p232_p10 }
  0x1e   :  { %242 = shalt.err (!%p239_p0)
}
  0x1f   :  { %s251_s0 = smov [#allocation7]  }
  0x20   :  { %40 = dma.vmem_to_smem %s38_s24, 16, %s251_s0, [#allocation4]  }
  0x21   :  { %243 = dma.done.wait [#allocation3], 512  }
  0x22   :  { %244 = vsyncadd [#allocation3], 4294966784 }
  0x23   :  { %245 = dma.done.wait [#allocation6], 128  }
  0x24   :  { %246 = vsyncadd [#allocation6], 4294967168 }
  0x25   :  { %247 = dma.done.wait [#allocation4], 16  }
  0x26   :  { %248 = vsyncadd [#allocation4], 4294967280 }
  0x27   :  { %50 = sfence }
  0x28   :  { %v57_v0 = vlaneseq  ;;  %v55_v2 = vld [vmem:[#allocation5] sm:$0xff]  ;;  %vm99_vm0 = vcmask 130048   ;;  %v52_v16 = vld [vmem:[#allocation2 + $0x8] sm:$0xff]  ;;  %v53_v17 = vld [vmem:[#allocation2 + $0x10] sm:$0xff]  ;;  %s183_s1 = sld [smem:[#allocation7 + $0x1]]  ;;  %vm172_vm2 = vcmask 7168  }
  0x29   :  { %v51_v11 = vld [vmem:[#allocation2] sm:$0xff]  ;;  %v54_v18 = vld [vmem:[#allocation2 + $0x18] sm:$0xff]  ;;  %s104_s2 = sld [smem:[#allocation7]]  ;;  %vm174_vm3 = vcmask 15360  }
  0x2a   :  { %v58_v1 = vshrl.u32 %v57_v0, 7 }
  0x2c   :  { %v109_v3 = vsub.s32 1, %v58_v1  ;;  %v113_v4 = vsub.s32 3, %v58_v1  ;;  %v117_v5 = vsub.s32 5, %v58_v1  ;;  %v121_v6 = vsub.s32 7, %v58_v1 }
  0x2d   :  { %v59_v7 = vsub.s32 0, %v58_v1  ;;  %v63_v8 = vsub.s32 2, %v58_v1  ;;  %v67_v9 = vsub.s32 4, %v58_v1  ;;  %v71_v10 = vsub.s32 6, %v58_v1 }
  0x2e   :  { %v110_v12 = vrot.slane %v55_v2, %v109_v3  ;;  %v114_v13 = vrot.slane %v55_v2, %v113_v4  ;;  %v118_v14 = vrot.slane %v55_v2, %v117_v5  ;;  %v122_v15 = vrot.slane %v55_v2, %v121_v6 }
  0x2f   :  { %v60_v19 = vrot.slane %v55_v2, %v59_v7  ;;  %v64_v20 = vrot.slane %v55_v2, %v63_v8  ;;  %v68_v21 = vrot.slane %v55_v2, %v67_v9  ;;  %v72_v22 = vrot.slane %v55_v2, %v71_v10 }
  0x30   :  { %v130_v23 = vrot.slane %v110_v12, %v109_v3  ;;  %v134_v24 = vrot.slane %v114_v13, %v109_v3  ;;  %v138_v25 = vrot.slane %v118_v14, %v109_v3  ;;  %v142_v26 = vrot.slane %v122_v15, %v109_v3 }
  0x31   :  { %v80_v27 = vrot.slane %v60_v19, %v59_v7  ;;  %v84_v28 = vrot.slane %v64_v20, %v59_v7  ;;  %v88_v29 = vrot.slane %v68_v21, %v59_v7  ;;  %v92_v30 = vrot.slane %v72_v22, %v59_v7 }
  0x32   :  { %v143_v31 = vmul.f32 %v130_v23, %v51_v11  ;;  %v144_v32 = vmul.f32 %v134_v24, %v52_v16  ;;  %v145_v33 = vmul.f32 %v138_v25, %v53_v17  ;;  %v146_v34 = vmul.f32 %v142_v26, %v54_v18 }
  0x33   :  { %v93_v35 = vmul.f32 %v80_v27, %v51_v11  ;;  %v94_v36 = vmul.f32 %v84_v28, %v52_v16  ;;  %v95_v37 = vmul.f32 %v88_v29, %v53_v17  ;;  %v96_v38 = vmul.f32 %v92_v30, %v54_v18 }
  0x34   :  { %v147_v39 = vadd.f32 %v144_v32, %v143_v31  ;;  %v149_v40 = vsel %vm99_vm0, %v146_v34, 0.0  ;;  %v154_v47 = vstv %s183_s1  ;;  %v105_v61 = vstv %s104_s2 }
  0x35   :  { %v97_v41 = vadd.f32 %v94_v36, %v93_v35  ;;  %v100_v44 = vsel %vm99_vm0, %v96_v38, 0.0 }
  0x36   :  { %v148_v42 = vadd.f32 %v147_v39, %v145_v33 }
  0x37   :  { %v98_v43 = vadd.f32 %v97_v41, %v95_v37 }
  0x38   :  { %v150_v45 = vadd.f32 %v149_v40, %v148_v42 }
  0x39   :  { %v101_v46 = vadd.f32 %v100_v44, %v98_v43 }
  0x3a   :  { %151 = vadd.xlane.f32.xlu0 %v150_v45 }
  0x3e   :  { %102 = vadd.xlane.f32.xlu0 %v101_v46 }
  0xc3   :  { %v152_v48 = vpop.xlane.xlu0 %151 }
  0xc4   :  { %v155_v49 = vadd.f32 %v154_v47, %v152_v48 }
  0xc6   :  { %v157_v50 = vand.u32 2147483647, %v155_v49  ;;  %v156_v63 = vmax.f32 %v155_v49, 0.0 }
  0xc7   :  { %v103_v62 = vpop.xlane.xlu0 %102 }
  0xc8   :  { %v158_v51 = vsub.f32 0.0, %v157_v50  ;;  %v106_v2 = vadd.f32 %v105_v61, %v103_v62 }
  0xca   :  { %v159_v52 = vmul.f32 1.442695, %v158_v51 }
  0xcc   :  { %187 = vpow2.f32 %v159_v52 }
  0xd9   :  { %v188_v53 = vpop.eup %187 }
  0xda   :  { %v161_v54 = vadd.f32 1.0, %v188_v53  ;;  %v164_v55 = vmul.f32 -0.5, %v188_v53  ;;  %v167_v57 = vand.u32 2147483647, %v188_v53 }
  0xdc   :  { %189 = vlog2.f32 %v161_v54  ;;  %v165_v56 = vadd.f32 1.0, %v164_v55  ;;  %vm168_vm1 = vcmp.lt.f32.partialorder %v167_v57, 0.0004427343 }
  0xde   :  { %v166_v60 = vmul.f32 %v188_v53, %v165_v56 }
  0xe9   :  { %v190_v58 = vpop.eup %189 }
  0xea   :  { %v163_v59 = vmul.f32 0.6931472, %v190_v58 }
  0xec   :  { %v169_v0 = vsel %vm168_vm1, %v166_v60, %v163_v59 }
  0xed   :  { %v170_v1 = vadd.f32 %v169_v0, %v156_v63 }
  0xef   :  { %v171_v3 = vadd.f32 1e-05, %v170_v1 }
  0xf1   :  { %v173_v4 = vsel %vm172_vm2, %v106_v2, %v171_v3 }
  0xf2   :  { %175 = vst.msk [vmem:[%s289_s3] sm:$0xff] %vm174_vm3, %v173_v4 }
  0xf3   :  { %180 = vsyncpa [#allocation3], 1 }
  0xf4   :  { %181 = vsyncpa [#allocation6], 1 }
  0xf5   :  { %182 = vsyncpa [#allocation4], 1 }

</bundles_post_ra>
